<compile_context>
chip_gen: v5e
topology: v5e:2x2
jax: 0.10.0
libtpu: 0.0.40
codegen_flags: <defaults>
</compile_context>

<pallas_src>
import functools

import jax
import jax.numpy as jnp
from jax.experimental import pallas as pl
from jax.experimental.pallas import tpu as pltpu


def _vmem_capacity_bytes():
    """Physical VMEM of the local chip; conservative fallback if unavailable."""
    try:
        return int(pltpu.get_tpu_info().vmem_capacity_bytes)
    except Exception:
        return 64 << 20  # v7x physical size == smallest of the targets


def _pick_tile_h(N, H, W, Cin, Cout, k_splits, budget_bytes):
    """VMEM-aware tile height.

    Budgets the double-buffered pipeline blocks plus the in-kernel window
    copy, im2col LHS slab(s) and f32 accumulator, then prefers >=4 total grid
    steps (pipeline depth and v7x dual-TensorCore sharding), then >=2.
    """
    Wp, bpe = W + 2, 2  # bf16 operands

    def vmem_bytes(th):
        body = th * Wp * Cin * bpe            # input body tile
        halo = 2 * Wp * Cin * bpe             # two 1-row halo tiles
        outb = th * W * Cout * bpe            # bf16 output tile
        wgt = 9 * Cin * Cout * bpe + 128 * 4  # weight slab + bias
        io = 2 * (body + halo + outb + wgt)   # double-buffered pipeline bufs
        window = (th + 2) * Wp * Cin * bpe    # in-kernel haloed window copy
        lhs = th * W * (9 // k_splits) * Cin * bpe   # im2col slab per matmul
        lhs *= 1 if k_splits == 1 else 2      # ~2 slabs live while accumulating
        acc = th * W * Cout * 4               # f32 accumulator
        return io + window + lhs + acc

    divisors = [t for t in range(H, 0, -1) if H % t == 0]
    fitting = [t for t in divisors if vmem_bytes(t) <= budget_bytes]
    if not fitting:
        # Nothing fits the soft budget; take the smallest tile and rely on the
        # explicit vmem_limit_bytes (spilling beats failing to tile).
        return 1
    for min_steps in (4, 2):
        for t in fitting:
            if N * (H // t) >= min_steps:
                return t
    return fitting[0]


def _conv_relu_kernel(xt_ref, xb_ref, xd_ref, w_ref, b_ref, o_ref, *,
                      th, width, cin, cout, k_splits):
    # xt_ref : (1, 1,  W+2, Cin)  halo row above the tile (clamped DMA, bf16)
    # xb_ref : (1, th, W+2, Cin)  body rows of the tile                 (bf16)
    # xd_ref : (1, 1,  W+2, Cin)  halo row below the tile (clamped DMA, bf16)
    # w_ref  : (3, 3*Cin, Cout) if k_splits==3 else (9*Cin, Cout)       (bf16)
    #          rows of each kw-slab ordered (kh, cin)
    # b_ref  : (1, Cout)           bias (f32)
    # o_ref  : (1, th, W, Cout)    output tile (bf16)
    h = pl.program_id(1)
    n_h = pl.num_programs(1)

    # Zero the halo rows that fall outside the image (the clamped index_maps
    # DMA'd a real row there; its contents are irrelevant).  Scalar multiply
    # keeps this on the VPU with no control flow.
    top = xt_ref[0] * (h > 0).astype(xt_ref.dtype)
    bot = xd_ref[0] * (h < n_h - 1).astype(xd_ref.dtype)

    # (th+2, W+2, Cin) haloed window; concat along the untiled leading dim.
    window = jnp.concatenate([top, xb_ref[0], bot], axis=0)

    def tap(kh, kw):  # one shifted (th*W, Cin) im2col slab
        return window[kh:kh + th, kw:kw + width, :].reshape(th * width, cin)

    if k_splits == 1:
        # Fused single MXU matmul, K = 9*Cin (v6e: 128 MiB VMEM, big tiles).
        lhs = jnp.concatenate(
            [tap(kh, kw) for kw in range(3) for kh in range(3)], axis=-1)
        acc = jnp.dot(lhs, w_ref[...], preferred_element_type=jnp.float32)
    else:
        # kw-major accumulation: 3 matmuls with K = 3*Cin.  Im2col footprint
        # is ~3x (not 9x) the input tile and only 3 kw sublane shifts.
        acc = None
        for kw in range(3):
            lhs = jnp.concatenate([tap(kh, kw) for kh in range(3)], axis=-1)
            d = jnp.dot(lhs, w_ref[kw], preferred_element_type=jnp.float32)
            acc = d if acc is None else acc + d

    acc = jnp.maximum(acc + b_ref[...], 0.0)          # bias + ReLU in f32 (VPU)
    # Lane-dense stores for production Cout >= 128; masked stores only for toy
    # channel counts (lane-dense W*Cout packing not worth the in-kernel relayout).
    o_ref[0] = acc.reshape(th, width, cout).astype(o_ref.dtype)


@functools.partial(jax.jit, static_argnames=("tile_h", "k_splits"))
def conv_relu(x_nchw, weight_oihw, bias, *, tile_h=None, k_splits=3):
    """Forward pass of ConvRelu: conv3x3(pad=1, dil=1) + ReLU. NCHW in/out.

    k_splits=3 (default): kw-major 3-matmul accumulation (v7x / v5e friendly).
    k_splits=1          : fused K=9*Cin single matmul (v6e, large VMEM).
    """
    assert k_splits in (1, 3)
    N, Cin, H, W = x_nchw.shape
    Cout = weight_oihw.shape[0]
    orig_dtype = x_nchw.dtype
    cdt = jnp.bfloat16
    Wp = W + 2

    cap = _vmem_capacity_bytes()
    vmem_limit = min(int(cap * 3 // 4), 96 << 20)
    budget = int(cap * 0.45)

    th = _pick_tile_h(N, H, W, Cin, Cout, k_splits, budget) if tile_h is None else tile_h
    assert H % th == 0, "tile_h must divide H"
    n_h = H // th

    # Wrapper glue: NCHW->NHWC + bf16 cast + zero-pad of W ONLY (H halo rows
    # are zeroed in-kernel, so no padded-H copy of the activation in HBM).
    # In an NHWC end-to-end model the transpose disappears entirely.
    x_nhwc = jnp.transpose(x_nchw, (0, 2, 3, 1)).astype(cdt)
    x_wpad = jnp.pad(x_nhwc, ((0, 0), (0, 0), (1, 1), (0, 0)))    # (N, H, W+2, Cin)

    # OIHW -> (kw, kh, cin, cout) -> (3, 3*Cin, Cout): each kw-slab has rows
    # ordered (kh, cin), matching the kernel's im2col concat order.
    w_slab = jnp.transpose(weight_oihw, (3, 2, 1, 0)).reshape(3, 3 * Cin, Cout)
    w_slab = w_slab.astype(cdt)
    b2d = bias.reshape(1, Cout).astype(jnp.float32)

    if k_splits == 1:
        w_in = w_slab.reshape(9 * Cin, Cout)
        w_spec = pl.BlockSpec((9 * Cin, Cout), lambda n, h: (0, 0))
    else:
        w_in = w_slab
        w_spec = pl.BlockSpec((3, 3 * Cin, Cout), lambda n, h: (0, 0, 0))

    kernel = functools.partial(_conv_relu_kernel, th=th, width=W,
                               cin=Cin, cout=Cout, k_splits=k_splits)

    out = pl.pallas_call(
        kernel,
        out_shape=jax.ShapeDtypeStruct((N, H, W, Cout), cdt),
        grid_spec=pltpu.PrefetchScalarGridSpec(
            num_scalar_prefetch=0,
            grid=(N, n_h),
            in_specs=[
                # 1-row halo ABOVE the tile: row h*th-1 (clamped; zeroed in-kernel at h==0)
                pl.BlockSpec((1, 1, Wp, Cin),
                             lambda n, h: (n, jnp.maximum(h * th - 1, 0), 0, 0)),
                # body rows [h*th, (h+1)*th)
                pl.BlockSpec((1, th, Wp, Cin), lambda n, h: (n, h, 0, 0)),
                # 1-row halo BELOW the tile: row (h+1)*th (clamped; zeroed at last tile)
                pl.BlockSpec((1, 1, Wp, Cin),
                             lambda n, h: (n, jnp.minimum((h + 1) * th, H - 1), 0, 0)),
                # weights / bias: grid-constant blocks (stay resident in VMEM)
                w_spec,
                pl.BlockSpec((1, Cout), lambda n, h: (0, 0)),
            ],
            out_specs=pl.BlockSpec((1, th, W, Cout), lambda n, h: (n, h, 0, 0)),
        ),
        compiler_params=pltpu.CompilerParams(
            dimension_semantics=("parallel", "parallel"),
            vmem_limit_bytes=vmem_limit),
    )(x_wpad, x_wpad, x_wpad, w_in, b2d)

    # NHWC -> NCHW done in bf16 (half the transpose traffic), upcast last.
    return jnp.transpose(out, (0, 3, 1, 2)).astype(orig_dtype)


if __name__ == "__main__":
    key = jax.random.PRNGKey(0)
    k_x, k_w, k_b = jax.random.split(key, 3)

    N, Cin, Cout, H, W = 2, 4, 8, 16, 16

    x = jax.random.normal(k_x, (N, Cin, H, W), dtype=jnp.float32)
    # PyTorch Conv2d parameter shapes: OIHW weight, (O,) bias.
    weight = jax.random.normal(k_w, (Cout, Cin, 3, 3), dtype=jnp.float32) * 0.1
    bias = jax.random.normal(k_b, (Cout,), dtype=jnp.float32) * 0.1

    # Reference: XLA conv (NCHW/OIHW, padding=1) + bias + ReLU, in f32.
    ref = jax.lax.conv_general_dilated(
        x, weight, window_strides=(1, 1), padding=((1, 1), (1, 1)),
        dimension_numbers=("NCHW", "OIHW", "NCHW"))
    ref = jnp.maximum(ref + bias[None, :, None, None], 0.0)

    # Default path: kw-major 3-matmul accumulation (v7x / v5e friendly).
    out = jax.block_until_ready(conv_relu(x, weight, bias))
    assert out.shape == (N, Cout, H, W)
    assert out.dtype == x.dtype
    # bf16 operands + bf16 kernel output (f32 accumulate) -> loosened tolerance.
    assert jnp.allclose(out, ref, atol=3e-2, rtol=3e-2)

    # Fused K=9*Cin path (v6e variant) must match too.
    out_fused = jax.block_until_ready(conv_relu(x, weight, bias, k_splits=1))
    assert jnp.allclose(out_fused, ref, atol=3e-2, rtol=3e-2)

    print("KERNEL_OK")
</pallas_src>

<mosaic_0001>
module attributes {stable_mosaic.version = 11 : i64} {
  func.func @_conv_relu_kernel(%arg0: i32, %arg1: i32, %arg2: memref<1x1x18x4xbf16, #tpu.memory_space<vmem>>, %arg3: memref<1x8x18x4xbf16, #tpu.memory_space<vmem>>, %arg4: memref<1x1x18x4xbf16, #tpu.memory_space<vmem>>, %arg5: memref<3x12x8xbf16, #tpu.memory_space<vmem>>, %arg6: memref<1x8xf32, #tpu.memory_space<vmem>>, %arg7: memref<1x8x16x8xbf16, #tpu.memory_space<vmem>>) attributes {dimension_semantics = [#tpu.dimension_semantics<parallel>, #tpu.dimension_semantics<parallel>], iteration_bounds = array<i64: 2, 2>, scalar_prefetch = 0 : i64, scratch_operands = 0 : i64, tpu.core_type = #tpu.core_type<tc>, window_params = [{transform_indices = @transform_0, window_bounds = array<i64: 1, 1, 18, 4>}, {transform_indices = @transform_1, window_bounds = array<i64: 1, 8, 18, 4>}, {transform_indices = @transform_2, window_bounds = array<i64: 1, 1, 18, 4>}, {pipeline_mode = #tpu.pipeline_mode<synchronous>, transform_indices = @transform_3, window_bounds = array<i64: 3, 12, 8>}, {pipeline_mode = #tpu.pipeline_mode<synchronous>, transform_indices = @transform_4, window_bounds = array<i64: 1, 8>}, {transform_indices = @transform_5, window_bounds = array<i64: 1, 8, 16, 8>}]} {
    %c0 = arith.constant 0 : index
    %c0_0 = arith.constant 0 : index
    %c0_1 = arith.constant 0 : index
    %c0_2 = arith.constant 0 : index
    %0 = vector.load %arg2[%c0, %c0_0, %c0_1, %c0_2] : memref<1x1x18x4xbf16, #tpu.memory_space<vmem>>, vector<1x1x18x4xbf16>
    %1 = vector.shape_cast %0 : vector<1x1x18x4xbf16> to vector<1x18x4xbf16>
    %c0_i32 = arith.constant 0 : i32
    %2 = arith.cmpi sgt, %arg1, %c0_i32 : i32
    %3 = arith.extui %2 : i1 to i32
    %4 = arith.sitofp %3 : i32 to f32
    %5 = arith.truncf %4 : f32 to bf16
    %6 = vector.broadcast %5 : bf16 to vector<1x18x4xbf16>
    %7 = arith.mulf %1, %6 : vector<1x18x4xbf16>
    %c0_3 = arith.constant 0 : index
    %c0_4 = arith.constant 0 : index
    %c0_5 = arith.constant 0 : index
    %c0_6 = arith.constant 0 : index
    %8 = vector.load %arg4[%c0_3, %c0_4, %c0_5, %c0_6] : memref<1x1x18x4xbf16, #tpu.memory_space<vmem>>, vector<1x1x18x4xbf16>
    %9 = vector.shape_cast %8 : vector<1x1x18x4xbf16> to vector<1x18x4xbf16>
    %c1_i32 = arith.constant 1 : i32
    %10 = arith.cmpi slt, %arg1, %c1_i32 : i32
    %11 = arith.extui %10 : i1 to i32
    %12 = arith.sitofp %11 : i32 to f32
    %13 = arith.truncf %12 : f32 to bf16
    %14 = vector.broadcast %13 : bf16 to vector<1x18x4xbf16>
    %15 = arith.mulf %9, %14 : vector<1x18x4xbf16>
    %c0_7 = arith.constant 0 : index
    %c0_8 = arith.constant 0 : index
    %c0_9 = arith.constant 0 : index
    %c0_10 = arith.constant 0 : index
    %16 = vector.load %arg3[%c0_7, %c0_8, %c0_9, %c0_10] : memref<1x8x18x4xbf16, #tpu.memory_space<vmem>>, vector<1x8x18x4xbf16>
    %17 = vector.shape_cast %16 : vector<1x8x18x4xbf16> to vector<8x18x4xbf16>
    %18 = tpu.concatenate %7, %17, %15 in 0 : vector<1x18x4xbf16>, vector<8x18x4xbf16>, vector<1x18x4xbf16> -> vector<10x18x4xbf16>
    %19 = vector.extract_strided_slice %18 {offsets = [0, 0, 0], sizes = [8, 16, 4], strides = [1, 1, 1]} : vector<10x18x4xbf16> to vector<8x16x4xbf16>
    %20 = vector.shape_cast %19 : vector<8x16x4xbf16> to vector<128x4xbf16>
    %21 = vector.extract_strided_slice %18 {offsets = [1, 0, 0], sizes = [8, 16, 4], strides = [1, 1, 1]} : vector<10x18x4xbf16> to vector<8x16x4xbf16>
    %22 = vector.shape_cast %21 : vector<8x16x4xbf16> to vector<128x4xbf16>
    %23 = vector.extract_strided_slice %18 {offsets = [2, 0, 0], sizes = [8, 16, 4], strides = [1, 1, 1]} : vector<10x18x4xbf16> to vector<8x16x4xbf16>
    %24 = vector.shape_cast %23 : vector<8x16x4xbf16> to vector<128x4xbf16>
    %25 = tpu.concatenate %20, %22, %24 in 1 : vector<128x4xbf16>, vector<128x4xbf16>, vector<128x4xbf16> -> vector<128x12xbf16>
    %c0_11 = arith.constant 0 : index
    %c0_12 = arith.constant 0 : index
    %c0_13 = arith.constant 0 : index
    %26 = vector.load %arg5[%c0_11, %c0_12, %c0_13] : memref<3x12x8xbf16, #tpu.memory_space<vmem>>, vector<1x12x8xbf16>
    %27 = vector.shape_cast %26 : vector<1x12x8xbf16> to vector<12x8xbf16>
    %cst = arith.constant dense<0.000000e+00> : vector<128x8xf32>
    %28 = tpu.matmul %25, %27, %cst {dimension_numbers = #tpu.dot_dimension_numbers<[1], [0], [0], [1], [0, 0, 1, 1], [], []>} : vector<128x12xbf16>, vector<12x8xbf16>, vector<128x8xf32> -> vector<128x8xf32>
    %29 = vector.extract_strided_slice %18 {offsets = [0, 1, 0], sizes = [8, 16, 4], strides = [1, 1, 1]} : vector<10x18x4xbf16> to vector<8x16x4xbf16>
    %30 = vector.shape_cast %29 : vector<8x16x4xbf16> to vector<128x4xbf16>
    %31 = vector.extract_strided_slice %18 {offsets = [1, 1, 0], sizes = [8, 16, 4], strides = [1, 1, 1]} : vector<10x18x4xbf16> to vector<8x16x4xbf16>
    %32 = vector.shape_cast %31 : vector<8x16x4xbf16> to vector<128x4xbf16>
    %33 = vector.extract_strided_slice %18 {offsets = [2, 1, 0], sizes = [8, 16, 4], strides = [1, 1, 1]} : vector<10x18x4xbf16> to vector<8x16x4xbf16>
    %34 = vector.shape_cast %33 : vector<8x16x4xbf16> to vector<128x4xbf16>
    %35 = tpu.concatenate %30, %32, %34 in 1 : vector<128x4xbf16>, vector<128x4xbf16>, vector<128x4xbf16> -> vector<128x12xbf16>
    %c1 = arith.constant 1 : index
    %c0_14 = arith.constant 0 : index
    %c0_15 = arith.constant 0 : index
    %36 = vector.load %arg5[%c1, %c0_14, %c0_15] : memref<3x12x8xbf16, #tpu.memory_space<vmem>>, vector<1x12x8xbf16>
    %37 = vector.shape_cast %36 : vector<1x12x8xbf16> to vector<12x8xbf16>
    %cst_16 = arith.constant dense<0.000000e+00> : vector<128x8xf32>
    %38 = tpu.matmul %35, %37, %cst_16 {dimension_numbers = #tpu.dot_dimension_numbers<[1], [0], [0], [1], [0, 0, 1, 1], [], []>} : vector<128x12xbf16>, vector<12x8xbf16>, vector<128x8xf32> -> vector<128x8xf32>
    %39 = arith.addf %28, %38 : vector<128x8xf32>
    %40 = vector.extract_strided_slice %18 {offsets = [0, 2, 0], sizes = [8, 16, 4], strides = [1, 1, 1]} : vector<10x18x4xbf16> to vector<8x16x4xbf16>
    %41 = vector.shape_cast %40 : vector<8x16x4xbf16> to vector<128x4xbf16>
    %42 = vector.extract_strided_slice %18 {offsets = [1, 2, 0], sizes = [8, 16, 4], strides = [1, 1, 1]} : vector<10x18x4xbf16> to vector<8x16x4xbf16>
    %43 = vector.shape_cast %42 : vector<8x16x4xbf16> to vector<128x4xbf16>
    %44 = vector.extract_strided_slice %18 {offsets = [2, 2, 0], sizes = [8, 16, 4], strides = [1, 1, 1]} : vector<10x18x4xbf16> to vector<8x16x4xbf16>
    %45 = vector.shape_cast %44 : vector<8x16x4xbf16> to vector<128x4xbf16>
    %46 = tpu.concatenate %41, %43, %45 in 1 : vector<128x4xbf16>, vector<128x4xbf16>, vector<128x4xbf16> -> vector<128x12xbf16>
    %c2 = arith.constant 2 : index
    %c0_17 = arith.constant 0 : index
    %c0_18 = arith.constant 0 : index
    %47 = vector.load %arg5[%c2, %c0_17, %c0_18] : memref<3x12x8xbf16, #tpu.memory_space<vmem>>, vector<1x12x8xbf16>
    %48 = vector.shape_cast %47 : vector<1x12x8xbf16> to vector<12x8xbf16>
    %cst_19 = arith.constant dense<0.000000e+00> : vector<128x8xf32>
    %49 = tpu.matmul %46, %48, %cst_19 {dimension_numbers = #tpu.dot_dimension_numbers<[1], [0], [0], [1], [0, 0, 1, 1], [], []>} : vector<128x12xbf16>, vector<12x8xbf16>, vector<128x8xf32> -> vector<128x8xf32>
    %50 = arith.addf %39, %49 : vector<128x8xf32>
    %c0_20 = arith.constant 0 : index
    %c0_21 = arith.constant 0 : index
    %51 = vector.load %arg6[%c0_20, %c0_21] : memref<1x8xf32, #tpu.memory_space<vmem>>, vector<1x8xf32>
    %52 = vector.broadcast %51 : vector<1x8xf32> to vector<128x8xf32>
    %53 = arith.addf %50, %52 : vector<128x8xf32>
    %cst_22 = arith.constant 0.000000e+00 : f32
    %54 = vector.broadcast %cst_22 : f32 to vector<128x8xf32>
    %55 = arith.maximumf %53, %54 : vector<128x8xf32>
    %56 = vector.shape_cast %55 : vector<128x8xf32> to vector<8x16x8xf32>
    %57 = arith.truncf %56 : vector<8x16x8xf32> to vector<8x16x8xbf16>
    %c0_23 = arith.constant 0 : index
    %c0_24 = arith.constant 0 : index
    %c0_25 = arith.constant 0 : index
    %c0_26 = arith.constant 0 : index
    %58 = vector.load %arg7[%c0_23, %c0_24, %c0_25, %c0_26] : memref<1x8x16x8xbf16, #tpu.memory_space<vmem>>, vector<1x8x16x8xbf16>
    %59 = vector.shape_cast %58 : vector<1x8x16x8xbf16> to vector<8x16x8xbf16>
    %60 = vector.shape_cast %57 : vector<8x16x8xbf16> to vector<1x8x16x8xbf16>
    tpu.vector_store %arg7[%c0_23, %c0_24, %c0_25, %c0_26], %60 {strides = array<i32>} : memref<1x8x16x8xbf16, #tpu.memory_space<vmem>>, vector<1x8x16x8xbf16>,
    return
  }
  func.func @transform_0(%arg0: i32, %arg1: i32) -> (i32, i32, i32, i32) {
    %c8_i32 = arith.constant 8 : i32
    %0 = arith.muli %arg1, %c8_i32 : i32
    %c1_i32 = arith.constant 1 : i32
    %1 = arith.subi %0, %c1_i32 : i32
    %c0_i32 = arith.constant 0 : i32
    %2 = arith.maxsi %1, %c0_i32 : i32
    %c0_i32_0 = arith.constant 0 : i32
    %c0_i32_1 = arith.constant 0 : i32
    %c0_i32_2 = arith.constant 0 : i32
    return %arg0, %2, %c0_i32_0, %c0_i32_1 : i32, i32, i32, i32
  }
  func.func @transform_1(%arg0: i32, %arg1: i32) -> (i32, i32, i32, i32) {
    %c0_i32 = arith.constant 0 : i32
    %c0_i32_0 = arith.constant 0 : i32
    %c0_i32_1 = arith.constant 0 : i32
    return %arg0, %arg1, %c0_i32, %c0_i32_0 : i32, i32, i32, i32
  }
  func.func @transform_2(%arg0: i32, %arg1: i32) -> (i32, i32, i32, i32) {
    %c1_i32 = arith.constant 1 : i32
    %0 = arith.addi %arg1, %c1_i32 : i32
    %c8_i32 = arith.constant 8 : i32
    %1 = arith.muli %0, %c8_i32 : i32
    %c15_i32 = arith.constant 15 : i32
    %2 = arith.minsi %1, %c15_i32 : i32
    %c0_i32 = arith.constant 0 : i32
    %c0_i32_0 = arith.constant 0 : i32
    %c0_i32_1 = arith.constant 0 : i32
    return %arg0, %2, %c0_i32, %c0_i32_0 : i32, i32, i32, i32
  }
  func.func @transform_3(%arg0: i32, %arg1: i32) -> (i32, i32, i32) {
    %c0_i32 = arith.constant 0 : i32
    %c0_i32_0 = arith.constant 0 : i32
    %c0_i32_1 = arith.constant 0 : i32
    %c0_i32_2 = arith.constant 0 : i32
    return %c0_i32, %c0_i32_0, %c0_i32_1 : i32, i32, i32
  }
  func.func @transform_4(%arg0: i32, %arg1: i32) -> (i32, i32) {
    %c0_i32 = arith.constant 0 : i32
    %c0_i32_0 = arith.constant 0 : i32
    %c0_i32_1 = arith.constant 0 : i32
    return %c0_i32, %c0_i32_0 : i32, i32
  }
  func.func @transform_5(%arg0: i32, %arg1: i32) -> (i32, i32, i32, i32) {
    %c0_i32 = arith.constant 0 : i32
    %c0_i32_0 = arith.constant 0 : i32
    %c0_i32_1 = arith.constant 0 : i32
    return %arg0, %arg1, %c0_i32, %c0_i32_0 : i32, i32, i32, i32
  }
}

</mosaic_0001>

<bundles_post_ra>
// kernel: conv_relu.1
= control target key start
LH: loop header
LB: loop body
LE: loop exit
PB: predicated region body
PF: predicated region fallthrough
CT: control target
= control target key end

     0   :  { %s1850_s18 = smov 0   ;;  %s1852_s19 = smov 0   ;;  %s2486_s0 = inlined_call_operand.vmem [shape: bf16[2,16,18,4], index: 0, kind: input, shape index: {}, may-alias: {0,1,2}]   ;;  %s2487_s1 = inlined_call_operand.vmem [shape: bf16[2,16,18,4], index: 1, kind: input, shape index: {}, may-alias: {0,1,2}]   ;;  %s2488_s2 = inlined_call_operand.vmem [shape: bf16[2,16,18,4], index: 2, kind: input, shape index: {}, may-alias: {0,1,2}]   ;;  %s2489_s3 = inlined_call_operand.vmem [shape: bf16[3,12,8], index: 3, kind: input, shape index: {}]   ;;  %s2490_s4 = inlined_call_operand.vmem [shape: f32[1,8], index: 4, kind: input, shape index: {}]   ;;  %s2491_s5 = inlined_call_operand.vmem [shape: bf16[2,16,16,8], index: 5, kind: output, shape index: {}]  }
   0x1   :  { %s1854_s20 = smov 0   ;;  %s1856_s21 = smov 0  }
   0x2   :  { %s1858_s22 = smov 0  }
   0x3 LB: > { %s24_s23 = sadd.s32 1, %s1808_s20  ;;  %s27_s24 = sadd.s32 1, %s1812_s21  ;;  %s1816_s22 = sphi %s1858_s22, %s15_s22   ;;  %s1812_s21 = sphi %s1856_s21, %s2500_s21   ;;  %s1808_s20 = sphi %s1854_s20, %s2499_s20   ;;  %s1804_s19 = sphi %s1852_s19, %s2498_s19   ;;  %s1800_s18 = sphi %s1850_s18, %s2497_s18  }
   0x4   : > { %p25_p0 = scmp.ge.s32.totalorder %s24_s23, 2  ;;  %p1597_p1 = scmp.ge.s32.totalorder %s1816_s22, 1 }
   0x5   : > { %p273_p2 = scmp.lt.s32.totalorder %s1816_s22, 5 }
   0x6   : > { %s2502_s23 = smov (%p25_p0, %s24_s23), 0  ;;  %s2504_s24 = smov (!%p25_p0, %s27_s24), %s1812_s21 }
   0x7   : > { %p274_p3 = pnand %p1597_p1, %p273_p2  ;;  %p29_p4 = scmp.ge.s32.totalorder %s2504_s24, 2 }
   0x8   : > { %s1883_s25 = sshll.u32 (!%p274_p3), %s1800_s18, 3  ;;  %p341_p5 = scmp.lt.s32.totalorder (!%p274_p3), %s1804_s19, 1 }
   0x9   : > { %s2506_s24 = smov (%p29_p4, %s2504_s24), 0  ;;  %277 = sbr.rel (%p274_p3) target bundleno = 416 (0x1a0), region = 40 }
   0xa   : > { %p357_p6 = scmp.lt.s32.totalorder (!%p274_p3), %s1883_s25, 15  ;;  %s1708_s29 = sadd.s32 (!%p274_p3), 8, %s1883_s25 }
   0xb   : > { %p1896_p7 = scmp.lt.s32.totalorder (!%p274_p3), %s1708_s29, 15  ;;  %p427_p8 = scmp.lt.s32.totalorder (!%p274_p3), %s1800_s18, 1 }
   0xc   : > { %s1818_s11 = smov (!%p274_p3), 8   ;;  %s1819_s12 = smov (!%p274_p3), 4  }
   0xd   : > { %p397_p12 = scmp.gt.s32.totalorder (!%p274_p3), %s1800_s18, 0 }
   0xe   : > { %s2508_s19 = smov (!%p341_p5, %s1804_s19), 1  ;;  %vm1108_vm0 = vcmask 1042432   ;;  %vm1109_vm1 = vcmask 1046532   ;;  %vm604_vm3 = vsmask.f32 3328  ;;  %s2510_s29 = smov (!%p1896_p7, %s1708_s29), 15 }
   0xf   : > { %s1889_s26 = scalar_select %p357_p6, %s1883_s25, 15  ;;  %vm1906_vm2 = vmor %vm1108_vm0, %vm1109_vm1  ;;  %vm605_vm4 = vsmask.f32 7440  ;;  %vm974_vm6 = vcmask 1045504   ;;  %vm560_vm7 = vcmask 31744   ;;  %vm585_vm8 = vcmask 64512  }
  0x10   : > { %s1892_s27 = smul.u32 48, %s2508_s19  ;;  %s2512_s29 = smov (!%p1896_p7, %s2510_s29), 15  ;;  %vm1980_vm5 = vmor %vm604_vm3, %vm605_vm4  ;;  %vm957_vm9 = vcmask 97280   ;;  %vm1429_vm10 = vcmask 60416  }
  0x11   : > { %s1733_s28 = smul.u32 3, %s1889_s26 }
  0x12   : > { %s428_s13 = scalar_select %p427_p8, 1, 0 }
  0x13   : > { %s361_s6 = sadd.s32 %s1733_s28, %s1892_s27  ;;  %s1734_s14 = smul.u32 3, %s2512_s29 }
  0x14   : > { %s1607_s7 = sshll.u32 %s361_s6, 2  ;;  %s1990_s15 = scvt.s32.f32 %s428_s13 }
  0x15   : > { %s1904_s10 = scalar_lea.vmem %s2487_s1, %s1607_s7  ;;  %s375_s16 = sadd.s32 %s1734_s14, %s1892_s27 }
  0x16   : > { %v1912_v1 = vld [vmem:[%s1904_s10 + $0xc] sm:$0xff]  ;;  %v1923_v4 = vld [vmem:[%s1904_s10 + $0x14] sm:$0x1]  ;;  %v1927_v7 = vld [vmem:[%s1904_s10] sm:$0xf]  ;;  %s1612_s17 = sshll.u32 %s375_s16, 2  ;;  %p431_p9 = scmp.ne.f32.partialorder %s1990_s15, %s1990_s15 }
  0x17   : > { %v457_v2 = vld [vmem:[%s1904_s10 + $0xc] sm:$0xf]  ;;  %v1916_v3 = vld [vmem:[%s1904_s10 + $0x10] sm:$0xf]  ;;  %544 = vrot.lane.b32.xlu0 %v1912_v1, %s1818_s11  ;;  %v1130_v8 = vrot.slane %v1923_v4, 5  ;;  %v1676_v11 = vrot.slane %v1927_v7, 9  ;;  %s377_s6 = scalar_lea.vmem %s2488_s2, %s1612_s17 }
  0x18   : > { %v1677_v5 = vrot.slane %v457_v2, 9  ;;  %v1127_v6 = vrot.slane %v1916_v3, 5  ;;  %v1933_v9 = vld [vmem:[%s1904_s10 + $0x4] sm:$0xf]  ;;  %v1936_v10 = vld [vmem:[%s1904_s10 + $0x8] sm:$0x1] }
  0x19   : > { %v1120_v14 = vrot.slane %v1933_v9, 5  ;;  %v1123_v15 = vrot.slane %v1936_v10, 5  ;;  %v1944_v16 = vld [vmem:[%s1904_s10 + $0x54] sm:$0xf]  ;;  %v1947_v17 = vld [vmem:[%s1904_s10] sm:$0xff]  ;;  %v656_v38 = vshrl.u32 %v457_v2, 16 }
  0x1a   : > { %v1128_v12 = vsel %vm1906_vm2, %v1677_v5, %v1127_v6  ;;  %v1129_v13 = vrot.slane %v1127_v6, 4  ;;  %v1950_v19 = vld [vmem:[%s1904_s10 + $0x58] sm:$0xf]  ;;  %v1953_v20 = vld [vmem:[%s1904_s10 + $0x5c] sm:$0x1]  ;;  %v800_v21 = vshrl.u32 %v1944_v16, 16  ;;  %523 = vrot.lane.b32.xlu2 %v1947_v17, %s1819_s12 }
  0x1b   : > { %v1187_v18 = vunpack.c.l.b16 %v1128_v12  ;;  %v803_v22 = vshll.u32 %v1944_v16, 16  ;;  %v1121_v24 = vsel %vm1906_vm2, %v1676_v11, %v1120_v14  ;;  %v1122_v25 = vrot.slane %v1120_v14, 4  ;;  %v1974_v39 = vld [vmem:[%s1904_s10 + $0x48] sm:$0xf]  ;;  %v1994_v53 = vld [vmem:[%s1904_s10 + $0x4c] sm:$0xf] }
  0x1c   : > { %v1131_v23 = vsel %vm1906_vm2, %v1129_v13, %v1130_v8  ;;  %v809_v26 = vshll.u32 %v1950_v19, 16  ;;  %v1185_v28 = vunpack.c.l.b16 %v1121_v24  ;;  %v802_v29 = vrot.slane %v800_v21, 4  ;;  %v2002_v56 = vld [vmem:[%s1904_s10 + $0x50] sm:$0x1]  ;;  %s432_s28 = sshrl.u32 %s1990_s15, 16  ;;  %s2043_s17 = sadd.s32 4294967295, %s1883_s25 }
  0x1d   : > { %v1188_v27 = vunpack.c.l.b16 %v1131_v23  ;;  %v805_v30 = vrot.slane %v803_v22, 5  ;;  %v1124_v31 = vsel %vm1906_vm2, %v1122_v25, %v1123_v15  ;;  %v813_v33 = vshrl.u32 %v1950_v19, 16  ;;  %v460_v5 = vld [vmem:[%s1904_s10 + $0x18] sm:$0xf]  ;;  %v461_v13 = vld [vmem:[%s1904_s10 + $0x1c] sm:$0xf] }
  0x1e   : > { %v811_v32 = vrot.slane %v809_v26, 5  ;;  %v819_v34 = vshll.u32 %v1953_v20, 16  ;;  %v1186_v36 = vunpack.c.l.b16 %v1124_v31  ;;  %v659_v43 = vshll.u32 %v457_v2, 16  ;;  %s433_s7 = sand.u32 1, %s432_s28  ;;  %v462_v22 = vld [vmem:[%s1904_s10 + $0x20] sm:$0x1] }
  0x1f   : > { %v1971_v35 = vpack.c.b16 %v1188_v27, %v1187_v18  ;;  %v806_v37 = vor.u32 %v805_v30, %v802_v29  ;;  %v815_v41 = vrot.slane %v813_v33, 4  ;;  %v665_v44 = vshll.u32 %v1916_v3, 16  ;;  %s434_s8 = sadd.s32 32767, %s433_s7  ;;  %v1725_v27 = vld [vmem:[%s377_s6] sm:$0xff]   ;;  %p339_p10 = scmp.gt.s32.totalorder %s2043_s17, 0 }
  0x20   : > { %v821_v42 = vrot.slane %v819_v34, 5  ;;  %v1987_v45 = vpack.c.b16 %v1186_v36, %v1185_v28  ;;  %v658_v47 = vrot.slane %v656_v38, 4  ;;  %v669_v48 = vshrl.u32 %v1916_v3, 16  ;;  %v426_v28 = vld [vmem:[%s377_s6 + $0x8] sm:$0x1]  ;;  %s435_s9 = sadd.s32 %s434_s8, %s1990_s15  ;;  %p1600_p11 = scmp.lt.s32.totalorder %s2043_s17, 15 }
  0x21   : > { %1229 = vrot.lane.b32.xlu1 %v1971_v35, %s1818_s11  ;;  %v807_v46 = vrot.slane %v806_v37, 4  ;;  %v816_v49 = vor.u32 %v815_v41, %v811_v32  ;;  %v661_v50 = vrot.slane %v659_v43, 5  ;;  %v667_v51 = vrot.slane %v665_v44, 5  ;;  %s436_s13 = sand.u32 4294901760, %s435_s9 }
  0x22   : > { %v675_v52 = vshll.u32 %v1923_v4, 16  ;;  %1210 = vrot.lane.b32.xlu0 %v1987_v45, %s1819_s12  ;;  %v671_v55 = vrot.slane %v669_v48, 4  ;;  %v776_v57 = vshrl.u32 %v1974_v39, 16  ;;  %v779_v58 = vshll.u32 %v1974_v39, 16  ;;  %s2514_s13 = smov (%p431_p9, %s436_s13), 2143289344 }
  0x23   : > { %v812_v54 = vsel %vm1980_vm5, %v807_v46, %v811_v32  ;;  %v817_v59 = vrot.slane %v816_v49, 4  ;;  %v662_v61 = vor.u32 %v661_v50, %v658_v47  ;;  %v785_v4 = vshll.u32 %v1994_v53, 16  ;;  %s439_s14 = sshrl.u32 %s2514_s13, 16 }
  0x24   : > { %v871_v60 = vunpack.c.l.b16 %v812_v54  ;;  %v677_v62 = vrot.slane %v675_v52, 5  ;;  %v672_v63 = vor.u32 %v671_v55, %v667_v51  ;;  %v778_v2 = vrot.slane %v776_v57, 4  ;;  %s440_s15 = sshll.u32 %s439_s14, 16 }
  0x25   : > { %v781_v3 = vrot.slane %v779_v58, 5  ;;  %v822_v6 = vsel %vm1980_vm5, %v817_v59, %v821_v42  ;;  %v663_v8 = vrot.slane %v662_v61, 4  ;;  %v789_v11 = vshrl.u32 %v1994_v53, 16  ;;  %s441_s16 = sor.u32 %s440_s15, %s439_s14 }
  0x26   : > { %v795_v12 = vshll.u32 %v2002_v56, 16  ;;  %v872_v14 = vunpack.c.l.b16 %v822_v6  ;;  %v673_v15 = vrot.slane %v672_v63, 4  ;;  %v787_v21 = vrot.slane %v785_v4, 5  ;;  %s340_s25 = scalar_select %p339_p10, %s2043_s17, 0 }
  0x27   : > { %v782_v18 = vor.u32 %v781_v3, %v778_v2  ;;  %v668_v23 = vsel %vm1980_vm5, %v663_v8, %v667_v51  ;;  %v791_v24 = vrot.slane %v789_v11, 4  ;;  %v1678_v26 = vrot.slane %v460_v5, 9  ;;  %s398_s18 = scalar_select %p397_p12, 1, 0 }
  0x28   : > { %v797_v25 = vrot.slane %v795_v12, 5  ;;  %v2023_v29 = vpack.c.b16 %v872_v14, %v871_v60  ;;  %v678_v30 = vsel %vm1980_vm5, %v673_v15, %v677_v62  ;;  %v851_v31 = vunpack.c.l.b16 %v668_v23  ;;  %s2516_s25 = smov (!%p1600_p11, %s340_s25), 15 }
  0x29   : > { %v783_v32 = vrot.slane %v782_v18, 4  ;;  %v852_v33 = vunpack.c.l.b16 %v678_v30  ;;  %v792_v34 = vor.u32 %v791_v24, %v787_v21  ;;  %v1134_v36 = vrot.slane %v461_v13, 5  ;;  %s1731_s28 = smul.u32 3, %s2516_s25 }
  0x2a   : > { %v1137_v37 = vrot.slane %v462_v22, 5  ;;  %905 = vrot.lane.b32.xlu1 %v2023_v29, %s1818_s11  ;;  %1212 = vrot.lane.b32.xlu0 %v1971_v35, %s1819_s12  ;;  %v1726_v41 = vunpack.c.l.bf16 %v1725_v27  ;;  %v1727_v42 = vunpack.c.h.bf16 %v1725_v27  ;;  %v446_v43 = vunpack.c.l.bf16 %v426_v28 }
  0x2b   : > { %v788_v38 = vsel %vm1980_vm5, %v783_v32, %v787_v21  ;;  %v2036_v44 = vpack.c.b16 %v852_v33, %v851_v31  ;;  %v793_v46 = vrot.slane %v792_v34, 4  ;;  %v1135_v48 = vsel %vm1906_vm2, %v1678_v26, %v1134_v36  ;;  %s2092_s29 = sadd.s32 %s1892_s27, %s1731_s28  ;;  %s2143_s27 = scvt.s32.f32 %s398_s18 }
  0x2c   : > { %v861_v47 = vunpack.c.l.b16 %v788_v38  ;;  %v1136_v49 = vrot.slane %v1134_v36, 4  ;;  %v1189_v50 = vunpack.c.l.b16 %v1135_v48  ;;  %v680_v51 = vshrl.u32 %v460_v5, 16  ;;  %s1605_s28 = sshll.u32 %s2092_s29, 2 }
  0x2d   : > { %v683_v52 = vshll.u32 %v460_v5, 16  ;;  %v798_v54 = vsel %vm1980_vm5, %v793_v46, %v797_v25  ;;  %v689_v55 = vshll.u32 %v461_v13, 16  ;;  %v693_v57 = vshrl.u32 %v461_v13, 16  ;;  %s402_s30 = sshrl.u32 %s2143_s27, 16  ;;  %p401_p13 = scmp.ne.f32.partialorder %s2143_s27, %s2143_s27 }
  0x2e   : > { %v699_v58 = vshll.u32 %v462_v22, 16  ;;  %v862_v59 = vunpack.c.l.b16 %v798_v54  ;;  %v1138_v60 = vsel %vm1906_vm2, %v1136_v49, %v1137_v37  ;;  %v442_v61 = vstv %s441_s16  ;;  %s403_s6 = sand.u32 1, %s402_s30  ;;  %s349_s30 = scalar_lea.vmem %s2486_s0, %s1605_s28 }
  0x2f   : > { %v682_v62 = vrot.slane %v680_v51, 4  ;;  %v1190_v63 = vunpack.c.l.b16 %v1138_v60  ;;  %v447_v2 = vunpack.c.l.bf16 %v442_v61  ;;  %v685_v3 = vrot.slane %v683_v52, 5  ;;  %s404_s7 = sadd.s32 32767, %s403_s6 }
  0x30   : > { %v691_v4 = vrot.slane %v689_v55, 5  ;;  %v2047_v5 = vpack.c.b16 %v862_v59, %v861_v47  ;;  %v695_v6 = vrot.slane %v693_v57, 4  ;;  %v701_v8 = vrot.slane %v699_v58, 5  ;;  %s405_s8 = sadd.s32 %s404_s7, %s2143_s27 }
  0x31   : > { %v632_v11 = vshrl.u32 %v1927_v7, 16  ;;  %v2051_v12 = vpack.c.b16 %v1190_v63, %v1189_v50  ;;  %v448_v13 = vmul.f32 %v1726_v41, %v447_v2  ;;  %v449_v14 = vmul.f32 %v1727_v42, %v447_v2  ;;  %s406_s9 = sand.u32 4294901760, %s405_s8 }
  0x32   : > { %v450_v15 = vmul.f32 %v447_v2, %v446_v43  ;;  %893 = vrot.lane.b32.xlu1 %v2036_v44, %s1818_s11  ;;  %886 = vrot.lane.b32.xlu0 %v2047_v5, %s1819_s12  ;;  %v686_v18 = vor.u32 %v685_v3, %v682_v62  ;;  %v696_v21 = vor.u32 %v695_v6, %v691_v4  ;;  %v635_v23 = vshll.u32 %v1927_v7, 16  ;;  %v464_v2 = vld [vmem:[%s1904_s10 + $0x28] sm:$0xf]  ;;  %s2518_s9 = smov (%p401_p13, %s406_s9), 2143289344 }
  0x33   : > { %v634_v22 = vrot.slane %v632_v11, 4  ;;  %1231 = vrot.lane.b32.xlu2 %v2051_v12, %s1818_s11  ;;  %v2060_v24 = vpack.c.bf16 %v448_v13, %v448_v13  ;;  %v2062_v25 = vpack.c.bf16 %v449_v14, %v449_v14  ;;  %v641_v27 = vshll.u32 %v1933_v9, 16  ;;  %s409_s17 = sshrl.u32 %s2518_s9, 16 }
  0x34   : > { %v2064_v26 = vpack.c.bf16 %v450_v15, %v450_v15  ;;  %v687_v28 = vrot.slane %v686_v18, 4  ;;  %v697_v30 = vrot.slane %v696_v21, 4  ;;  %v637_v31 = vrot.slane %v635_v23, 5  ;;  %v2104_v23 = vld [vmem:[%s1904_s10 + $0x2c] sm:$0x1]  ;;  %s410_s25 = sshll.u32 %s409_s17, 16 }
  0x35   : > { %v645_v32 = vshrl.u32 %v1933_v9, 16  ;;  %v824_v7 = vshrl.u32 %v2060_v24, 16  ;;  %v827_v33 = vshll.u32 %v2060_v24, 16  ;;  %v833_v34 = vshll.u32 %v2062_v25, 16  ;;  %s411_s29 = sor.u32 %s410_s25, %s409_s17 }
  0x36   : > { %v837_v36 = vshrl.u32 %v2062_v25, 16  ;;  %v843_v37 = vshll.u32 %v2064_v26, 16  ;;  %v692_v38 = vsel %vm1980_vm5, %v687_v28, %v691_v4  ;;  %v702_v41 = vsel %vm1980_vm5, %v697_v30, %v701_v8 }
  0x37   : > { %v638_v9 = vor.u32 %v637_v31, %v634_v22  ;;  %v826_v42 = vrot.slane %v824_v7, 4  ;;  %v829_v43 = vrot.slane %v827_v33, 5  ;;  %v835_v46 = vrot.slane %v833_v34, 5  ;;  %v463_v22 = vld [vmem:[%s1904_s10 + $0x24] sm:$0xf]  ;;  %v1716_v7 = vld [vmem:[%s1904_s10 + $0x54] sm:$0xff] }
  0x38   : > { %v839_v47 = vrot.slane %v837_v36, 4  ;;  %v845_v48 = vrot.slane %v843_v37, 5  ;;  %v643_v52 = vrot.slane %v641_v27, 5  ;;  %v647_v54 = vrot.slane %v645_v32, 4  ;;  %v2115_v32 = vld [vmem:[%s1904_s10 + $0x48] sm:$0xff] }
  0x39   : > { %v639_v49 = vrot.slane %v638_v9, 4  ;;  %v830_v50 = vor.u32 %v829_v43, %v826_v42  ;;  %v853_v55 = vunpack.c.l.b16 %v692_v38  ;;  %v854_v57 = vunpack.c.l.b16 %v702_v41  ;;  %v467_v41 = vld [vmem:[%s1904_s10 + $0x34] sm:$0xf] }
  0x3a   : > { %v840_v51 = vor.u32 %v839_v47, %v835_v46  ;;  %876 = vrot.lane.b32.xlu1 %v2036_v44, %s1819_s12  ;;  %525 = vrot.lane.b32.xlu0 %v1912_v1, %s1819_s12  ;;  %v651_v58 = vshll.u32 %v1936_v10, 16  ;;  %v648_v62 = vor.u32 %v647_v54, %v643_v52  ;;  %v1141_v15 = vrot.slane %v464_v2, 5 }
  0x3b   : > { %v831_v59 = vrot.slane %v830_v50, 4  ;;  %v644_v61 = vsel %vm1980_vm5, %v639_v49, %v643_v52  ;;  %v2098_v11 = vpack.c.b16 %v854_v57, %v853_v55  ;;  %v1679_v28 = vrot.slane %v463_v22, 9  ;;  %v468_v52 = vld [vmem:[%s1904_s10 + $0x38] sm:$0x1] }
  0x3c   : > { %v841_v60 = vrot.slane %v840_v51, 4  ;;  %v653_v63 = vrot.slane %v651_v58, 5  ;;  %v649_v10 = vrot.slane %v648_v62, 4  ;;  %v849_v13 = vunpack.c.l.b16 %v644_v61 }
  0x3d   : > { %v836_v3 = vsel %vm1980_vm5, %v831_v59, %v835_v46  ;;  %v1143_v30 = vrot.slane %v1141_v15, 4  ;;  %v1144_v31 = vrot.slane %v2104_v23, 5  ;;  %v1142_v33 = vsel %vm1906_vm2, %v1679_v28, %v1141_v15 }
  0x3e   : > { %v846_v4 = vsel %vm1980_vm5, %v841_v60, %v845_v48  ;;  %v890_v6 = vunpack.c.l.b16 %v836_v3  ;;  %v654_v14 = vsel %vm1980_vm5, %v649_v10, %v653_v63  ;;  %v1191_v36 = vunpack.c.l.b16 %v1142_v33  ;;  %v466_v48 = vld [vmem:[%s1904_s10 + $0x30] sm:$0xf] }
  0x3f   : > { %v891_v8 = vunpack.c.l.b16 %v846_v4  ;;  %v850_v21 = vunpack.c.l.b16 %v654_v14  ;;  %v1145_v34 = vsel %vm1906_vm2, %v1143_v30, %v1144_v31  ;;  %v1162_v38 = vrot.slane %v1994_v53, 5 }
  0x40   : > { %v1192_v37 = vunpack.c.l.b16 %v1145_v34  ;;  %v1682_v9 = vrot.slane %v1974_v39, 9  ;;  %v1165_v43 = vrot.slane %v2002_v56, 5  ;;  %v1148_v49 = vrot.slane %v467_v41, 5 }
  0x41   : > { %v892_v18 = vpack.c.b16 %v891_v8, %v890_v6  ;;  %v2109_v27 = vpack.c.b16 %v850_v21, %v849_v13  ;;  %v1164_v42 = vrot.slane %v1162_v38, 4  ;;  %v704_v50 = vshrl.u32 %v463_v22, 16  ;;  %v2155_v8 = vld [vmem:[%s1904_s10 + $0x24] sm:$0xff] }
  0x42   : > { %895 = vrot.lane.b32.xlu0 %v2098_v11, %s1818_s11  ;;  %v2132_v46 = vpack.c.b16 %v1192_v37, %v1191_v36  ;;  %v1163_v47 = vsel %vm1906_vm2, %v1682_v9, %v1162_v38  ;;  %v707_v39 = vshll.u32 %v463_v22, 16  ;;  %v713_v54 = vshll.u32 %v464_v2, 16 }
  0x43   : > { %907 = vrot.lane.b32.xlu1 %v892_v18, %s1818_s11  ;;  %874 = vrot.lane.b32.xlu2 %v2109_v27, %s1819_s12  ;;  %v1166_v53 = vsel %vm1906_vm2, %v1164_v42, %v1165_v43  ;;  %v1197_v51 = vunpack.c.l.b16 %v1163_v47  ;;  %v717_v55 = vshrl.u32 %v464_v2, 16  ;;  %v1680_v58 = vrot.slane %v466_v48, 9 }
  0x44   : > { %v1198_v56 = vunpack.c.l.b16 %v1166_v53  ;;  %v1150_v59 = vrot.slane %v1148_v49, 4  ;;  %v1151_v60 = vrot.slane %v468_v52, 5  ;;  %v706_v61 = vrot.slane %v704_v50, 4  ;;  %v470_v50 = vld [vmem:[%s1904_s10 + $0x40] sm:$0xf] }
  0x45   : > { %v709_v62 = vrot.slane %v707_v39, 5  ;;  %v715_v63 = vrot.slane %v713_v54, 5  ;;  %v719_v2 = vrot.slane %v717_v55, 4  ;;  %v728_v3 = vshrl.u32 %v466_v48, 16  ;;  %v469_v54 = vld [vmem:[%s1904_s10 + $0x3c] sm:$0xf] }
  0x46   : > { %v2149_v57 = vpack.c.b16 %v1198_v56, %v1197_v51  ;;  %v731_v4 = vshll.u32 %v466_v48, 16  ;;  %v737_v10 = vshll.u32 %v467_v41, 16  ;;  %v741_v6 = vshrl.u32 %v467_v41, 16  ;;  %v2191_v56 = vld [vmem:[%s1904_s10 + $0x30] sm:$0xff] }
  0x47   : > { %v1149_v13 = vsel %vm1906_vm2, %v1680_v58, %v1148_v49  ;;  %v1152_v14 = vsel %vm1906_vm2, %v1150_v59, %v1151_v60  ;;  %v710_v15 = vor.u32 %v709_v62, %v706_v61  ;;  %v720_v18 = vor.u32 %v719_v2, %v715_v63  ;;  %v471_v58 = vld [vmem:[%s1904_s10 + $0x44] sm:$0x1] }
  0x48   : > { %v723_v21 = vshll.u32 %v2104_v23, 16  ;;  %v730_v22 = vrot.slane %v728_v3, 4  ;;  %v733_v28 = vrot.slane %v731_v4, 5  ;;  %v739_v30 = vrot.slane %v737_v10, 5  ;;  %v1665_v4 = vld [vmem:[%s2489_s3] sm:$0xf] }
  0x49   : > { %v743_v31 = vrot.slane %v741_v6, 4  ;;  %v1193_v33 = vunpack.c.l.b16 %v1149_v13  ;;  %v1194_v34 = vunpack.c.l.b16 %v1152_v14  ;;  %v711_v36 = vrot.slane %v710_v15, 4  ;;  %v1717_v10 = vld [vmem:[%s2489_s3] sm:$0x30] }
  0x4a   : > { %556 = vrot.lane.b32.xlu0 %v1716_v7, %s1818_s11  ;;  %v725_v23 = vrot.slane %v723_v21, 5  ;;  %v721_v37 = vrot.slane %v720_v18, 4  ;;  %v734_v38 = vor.u32 %v733_v28, %v730_v22  ;;  %v747_v9 = vshll.u32 %v468_v52, 16 }
  0x4b   : > { %535 = vrot.lane.b32.xlu1 %v2115_v32, %s1819_s12  ;;  %888 = vrot.lane.b32.xlu2 %v2023_v29, %s1819_s12  ;;  %v2140_v29 = vld [vmem:[%s1904_s10 + $0x18] sm:$0xff]  ;;  %v744_v41 = vor.u32 %v743_v31, %v739_v30  ;;  %v2167_v42 = vpack.c.b16 %v1194_v34, %v1193_v33  ;;  %v716_v43 = vsel %vm1980_vm5, %v711_v36, %v715_v63  ;;  %v1155_v55 = vrot.slane %v470_v50, 5 }
  0x4c   : > { %v735_v47 = vrot.slane %v734_v38, 4  ;;  %v749_v49 = vrot.slane %v747_v9, 5  ;;  %v855_v53 = vunpack.c.l.b16 %v716_v43  ;;  %v752_v59 = vshrl.u32 %v469_v54, 16 }
  0x4d   : > { %v745_v48 = vrot.slane %v744_v41, 4  ;;  %v755_v60 = vshll.u32 %v469_v54, 16  ;;  %v761_v61 = vshll.u32 %v470_v50, 16  ;;  %v765_v62 = vshrl.u32 %v470_v50, 16 }
  0x4e   : > { %v740_v52 = vsel %vm1980_vm5, %v735_v47, %v739_v30  ;;  %v1681_v6 = vrot.slane %v469_v54, 9  ;;  %v1157_v13 = vrot.slane %v1155_v55, 4  ;;  %v1158_v14 = vrot.slane %v471_v58, 5 }
  0x4f   : > { %v750_v39 = vsel %vm1980_vm5, %v745_v48, %v749_v49  ;;  %v857_v2 = vunpack.c.l.b16 %v740_v52  ;;  %v1666_v15 = vor.u32 %v1717_v10, %v1665_v4  ;;  %v754_v18 = vrot.slane %v752_v59, 4  ;;  %v1719_v52 = vld [vmem:[%s2489_s3 + $0x10] sm:$0x30] }
  0x50   : > { %v858_v3 = vunpack.c.l.b16 %v750_v39  ;;  %v757_v21 = vrot.slane %v755_v60, 5  ;;  %v1178_v22 = vrot.slane %v2062_v25, 5  ;;  %v763_v28 = vrot.slane %v761_v61, 5 }
  0x51   : > { %v767_v30 = vrot.slane %v765_v62, 4  ;;  %v2209_v31 = vsel %vm974_vm6, %v1666_v15, 0  ;;  %v541_v33 = vunpack.c.l.b16 %v2060_v24  ;;  %v542_v34 = vunpack.c.l.b16 %v2062_v25 }
  0x52   : > { %878 = vrot.lane.b32.xlu0 %v2098_v11, %s1819_s12  ;;  %1058 = vmatpush.bf16.msra.mxu1 %v2209_v31  ;;  %v1684_v36 = vrot.slane %v2060_v24, 9  ;;  %v1181_v38 = vrot.slane %v2064_v26, 5  ;;  %v1156_v41 = vsel %vm1906_vm2, %v1681_v6, %v1155_v55  ;;  %v1159_v9 = vsel %vm1906_vm2, %v1157_v13, %v1158_v14  ;;  %v396_v14 = vld [vmem:[%s349_s30 + $0x8] sm:$0x1] }
  0x53   : > { %1233 = vrot.lane.b32.xlu1 %v2132_v46, %s1818_s11  ;;  %546 = vrot.lane.b32.xlu2 %v2140_v29, %s1818_s11  ;;  %v758_v43 = vor.u32 %v757_v21, %v754_v18  ;;  %v768_v25 = vor.u32 %v767_v30, %v763_v28  ;;  %v543_v48 = vpack.c.b16 %v542_v34, %v541_v33  ;;  %v412_v50 = vstv %s411_s29 }
  0x54   : > { %v1179_v24 = vsel %vm1906_vm2, %v1684_v36, %v1178_v22  ;;  %v1195_v39 = vunpack.c.l.b16 %v1156_v41  ;;  %v1196_v54 = vunpack.c.l.b16 %v1159_v9  ;;  %v417_v62 = vunpack.c.l.bf16 %v412_v50  ;;  %v1653_v9 = vld [vmem:[%s2489_s3 + $0x8] sm:$0xf] }
  0x55   : > { %v1226_v47 = vunpack.c.l.b16 %v1179_v24  ;;  %v759_v59 = vrot.slane %v758_v43, 4  ;;  %v769_v60 = vrot.slane %v768_v25, 4  ;;  %v1170_v21 = vrot.slane %v1950_v19, 5  ;;  %v1718_v43 = vld [vmem:[%s2489_s3 + $0x8] sm:$0x30] }
  0x56   : > { %v2249_v10 = vpack.c.b16 %v1196_v54, %v1195_v39  ;;  %v416_v33 = vunpack.c.l.bf16 %v396_v14  ;;  %v1683_v36 = vrot.slane %v1944_v16, 9 }
  0x57   : > { %v764_v6 = vsel %vm1980_vm5, %v759_v59, %v763_v28 }
  0x58   : > { %v420_v41 = vmul.f32 %v417_v62, %v416_v33  ;;  %v1171_v16 = vsel %vm1906_vm2, %v1683_v36, %v1170_v21  ;;  %v1714_v36 = vld [vmem:[%s1904_s10 + $0x3c] sm:$0xff]  ;;  %s1614_s10 = sshll.u32 %s1889_s26, 1 }
  0x59   : > { %v1207_v50 = vunpack.c.l.b16 %v1171_v16 }
  0x5a   : > { %537 = vrot.lane.b32.xlu0 %v1716_v7, %s1819_s12  ;;  %v726_v7 = vsel %vm1980_vm5, %v721_v37, %v725_v23  ;;  %v1180_v23 = vrot.slane %v1178_v22, 4  ;;  %v2218_v37 = vpack.c.b16 %v858_v3, %v857_v2  ;;  %v859_v22 = vunpack.c.l.b16 %v764_v6 }
  0x5b   : > { %548 = vrot.lane.b32.xlu1 %v2155_v8, %s1818_s11  ;;  %1214 = vrot.lane.b32.xlu2 %v2051_v12, %s1819_s12  ;;  %v856_v51 = vunpack.c.l.b16 %v726_v7  ;;  %v771_v7 = vshll.u32 %v471_v58, 16 }
  0x5c   : > { %v1182_v26 = vsel %vm1906_vm2, %v1180_v23, %v1181_v38  ;;  %v1172_v23 = vrot.slane %v1170_v21, 4  ;;  %v1173_v38 = vrot.slane %v1953_v20, 5 }
  0x5d   : > { %v2194_v63 = vpack.c.b16 %v856_v51, %v855_v53  ;;  %v1227_v49 = vunpack.c.l.b16 %v1182_v26  ;;  %v1721_v53 = vld [vmem:[%s349_s30] sm:$0xff]   ;;  %v1689_v51 = vld [vmem:[%s2489_s3 + $0x10] sm:$0xf]  ;;  %v773_v61 = vrot.slane %v771_v7, 5  ;;  %v1654_v7 = vor.u32 %v1718_v43, %v1653_v9 }
  0x5e   : > { %v1690_v58 = vor.u32 %v1719_v52, %v1689_v51  ;;  %v1722_v2 = vunpack.c.l.bf16 %v1721_v53  ;;  %v1723_v3 = vunpack.c.h.bf16 %v1721_v53  ;;  %v1174_v20 = vsel %vm1906_vm2, %v1172_v23, %v1173_v38 }
  0x5f   : > { %v2242_v55 = vpack.c.b16 %v1227_v49, %v1226_v47  ;;  %v774_v13 = vsel %vm1980_vm5, %v769_v60, %v773_v61  ;;  %v423_v26 = vpack.c.bf16 %v420_v41, %v420_v41  ;;  %v1208_v53 = vunpack.c.l.b16 %v1174_v20 }
  0x60   : > { %v2246_v4 = vsel %vm974_vm6, %v1690_v58, 0  ;;  %v418_v15 = vmul.f32 %v1722_v2, %v417_v62  ;;  %v419_v18 = vmul.f32 %v1723_v3, %v417_v62  ;;  %v860_v30 = vunpack.c.l.b16 %v774_v13 }
  0x61   : > { %1319 = vmatpush.bf16.msra.mxu2 %v2246_v4  ;;  %v1116_v54 = vrot.slane %v423_v26, 5  ;;  %v1209_v2 = vpack.c.b16 %v1208_v53, %v1207_v50 }
  0x62   : > { %1235 = vrot.lane.b32.xlu0 %v2167_v42, %s1818_s11  ;;  %v421_v28 = vpack.c.bf16 %v418_v15, %v418_v15  ;;  %v422_v34 = vpack.c.bf16 %v419_v18, %v419_v18  ;;  %v2264_v19 = vpack.c.b16 %v860_v30, %v859_v22 }
  0x63   : > { %1216 = vrot.lane.b32.xlu1 %v2132_v46, %s1819_s12  ;;  %527 = vrot.lane.b32.xlu2 %v2140_v29, %s1819_s12 }
  0x64   : > { %v494_v24 = vunpack.c.l.b16 %v421_v28  ;;  %v495_v25 = vunpack.c.l.b16 %v422_v34  ;;  %v1113_v47 = vrot.slane %v422_v34, 5  ;;  %v1675_v52 = vrot.slane %v421_v28, 9 }
  0x65   : > { %v608_v58 = vshrl.u32 %v421_v28, 16  ;;  %v611_v59 = vshll.u32 %v421_v28, 16  ;;  %v617_v60 = vshll.u32 %v422_v34, 16  ;;  %v621_v61 = vshrl.u32 %v422_v34, 16 }
  0x66   : > { %v510_v49 = vpack.c.b16 %v495_v25, %v494_v24  ;;  %v1115_v39 = vrot.slane %v1113_v47, 4  ;;  %v1114_v3 = vsel %vm1906_vm2, %v1675_v52, %v1113_v47  ;;  %v627_v34 = vshll.u32 %v423_v26, 16 }
  0x67   : > { %v610_v13 = vrot.slane %v608_v58, 4  ;;  %v613_v15 = vrot.slane %v611_v59, 5  ;;  %v619_v18 = vrot.slane %v617_v60, 5  ;;  %v623_v21 = vrot.slane %v621_v61, 4 }
  0x68   : > { %v1117_v6 = vsel %vm1906_vm2, %v1115_v39, %v1116_v54  ;;  %v1183_v22 = vunpack.c.l.b16 %v1114_v3  ;;  %v629_v9 = vrot.slane %v627_v34, 5 }
  0x69   : > { %v1184_v30 = vunpack.c.l.b16 %v1117_v6  ;;  %v614_v33 = vor.u32 %v613_v15, %v610_v13  ;;  %v624_v28 = vor.u32 %v623_v21, %v619_v18 }
  0x6a   : > { %550 = vrot.lane.b32.xlu0 %v2191_v56, %s1818_s11 }
  0x6b   : > { %529 = vrot.lane.b32.xlu1 %v2155_v8, %s1819_s12  ;;  %897 = vrot.lane.b32.xlu2 %v2194_v63, %s1818_s11  ;;  %v1199_v23 = vpack.c.b16 %v1184_v30, %v1183_v22  ;;  %v615_v38 = vrot.slane %v614_v33, 4  ;;  %v625_v41 = vrot.slane %v624_v28, 4 }
  0x6d   : > { %v630_v16 = vsel %vm1980_vm5, %v625_v41, %v629_v9 }
  0x6e   : > { %v848_v26 = vunpack.c.l.b16 %v630_v16 }
  0x72   : > { %1222 = vrot.lane.b32.xlu0 %v2149_v57, %s1819_s12 }
  0x73   : > { %899 = vrot.lane.b32.xlu1 %v2218_v37, %s1818_s11  ;;  %558 = vrot.lane.b32.xlu2 %v543_v48, %s1818_s11  ;;  %v976_v48 = vsel %vm974_vm6, %v1654_v7, 0 }
  0x74   : > { %985 = vmatpush.bf16.msra.mxu0 %v976_v48  ;;  %1728 = vmatpush.bf16.msra.mxu3 %v976_v48  ;;  %v524_v51 = vpop.permute.xlu2 %523 }
  0x75   : > { %v563_v62 = vsel %vm560_vm7, %v510_v49, %v524_v51 }
  0x78   : > { %1729 = vmatpush.bf16.msrb.mxu3 %v2209_v31 }
  0x7a   : > { %531 = vrot.lane.b32.xlu0 %v2191_v56, %s1819_s12 }
  0x7b   : > { %1237 = vrot.lane.b32.xlu1 %v2249_v10, %s1818_s11  ;;  %880 = vrot.lane.b32.xlu2 %v2194_v63, %s1819_s12 }
  0x82   : > { %901 = vrot.lane.b32.xlu0 %v2264_v19, %s1818_s11 }
  0x83   : > { %882 = vrot.lane.b32.xlu1 %v2218_v37, %s1819_s12  ;;  %1218 = vrot.lane.b32.xlu2 %v2167_v42, %s1819_s12 }
  0x89   : > { %v545_v31 = vpop.permute.xlu0 %544 }
  0x8a   : > { %1239 = vrot.lane.b32.xlu0 %v2149_v57, %s1818_s11  ;;  %v587_v14 = vsel %vm585_vm8, %v563_v62, %v545_v31 }
  0x8b   : > { %1220 = vrot.lane.b32.xlu1 %v2249_v10, %s1819_s12  ;;  %1241 = vrot.lane.b32.xlu2 %v1209_v2, %s1818_s11 }
  0x8c   : > { %1667 = vmatmul.msk.bf16.vlgmr.msra.gmra.mxu1 %vm957_vm9, %v587_v14 }
  0x8d   : > { %v1232_v24 = vpop.permute.xlu2 %1231 }
  0x92   : > { %884 = vrot.lane.b32.xlu0 %v2264_v19, %s1819_s12 }
  0x93   : > { %1243 = vrot.lane.b32.xlu1 %v2242_v55, %s1818_s11  ;;  %v1230_v0 = vpop.permute.xlu1 %1229  ;;  %552 = vrot.lane.b32.xlu2 %v1714_v36, %s1818_s11  ;;  %v620_v55 = vsel %vm1980_vm5, %v615_v38, %v619_v18 }
  0x94   : > { %v1211_v43 = vpop.permute.xlu0 %1210  ;;  %v847_v20 = vunpack.c.l.b16 %v620_v55 }
  0x95   : > { %v1247_v25 = vsel %vm560_vm7, %v1199_v23, %v1211_v43 }
  0x96   : > { %v1270_v7 = vsel %vm585_vm8, %v1247_v25, %v1230_v0  ;;  %v863_v50 = vpack.c.b16 %v848_v26, %v847_v20 }
  0x97   : > { %1691 = vmatmul.msk.bf16.vlgmr.msra.gmra.mxu2 %vm957_vm9, %v1270_v7 }
  0x9b   : > { %554 = vrot.lane.b32.xlu1 %v2115_v32, %s1818_s11  ;;  %1224 = vrot.lane.b32.xlu2 %v1209_v2, %s1819_s12 }
  0x9c   : > { %v906_v47 = vpop.permute.xlu1 %905  ;;  %v1213_v48 = vpop.permute.xlu0 %1212 }
  0x9d   : > { %v875_v49 = vpop.permute.xlu2 %874  ;;  %v1250_v51 = vsel %vm560_vm7, %v1987_v45, %v1213_v48 }
  0x9e   : > { %v911_v53 = vsel %vm560_vm7, %v863_v50, %v875_v49  ;;  %v1272_v60 = vsel %vm585_vm8, %v1250_v51, %v1232_v24 }
  0xa3   : > { %533 = vrot.lane.b32.xlu2 %v1714_v36, %s1819_s12 }
  0xa4   : > { %v894_v52 = vpop.permute.xlu1 %893  ;;  %v887_v40 = vpop.permute.xlu0 %886 }
  0xa5   : > { %v929_v39 = vsel %vm560_vm7, %v2264_v19, %v887_v40  ;;  %v934_v54 = vsel %vm585_vm8, %v911_v53, %v894_v52  ;;  %v889_v58 = vpop.permute.xlu2 %888 }
  0xa6   : > { %1655 = vmatmul.msk.bf16.vlgmr.msra.gmra.mxu0 %vm957_vm9, %v934_v54  ;;  %v946_v59 = vsel %vm585_vm8, %v929_v39, %v906_v47  ;;  %v932_v31 = vsel %vm560_vm7, %v2047_v5, %v889_v58 }
  0xa7   : > { %1661 = vmatmul.msk.bf16.vlgmr.msra.gmra.mxu3 %vm957_vm9, %v946_v59  ;;  %1692 = vmatmul.msk.bf16.gmra.mxu2 %vm957_vm9, %v1272_v60 }
  0xa8   : > { %1730 = vmatpush.bf16.msra.mxu3 %v2246_v4 }
  0xab   : > { %903 = vrot.lane.b32.xlu2 %v2047_v5, %s1818_s11  ;;  %s1615_s11 = sshll.u32 %s2508_s19, 5 }
  0xac   : > { %v877_v45 = vpop.permute.xlu1 %876  ;;  %v526_v19 = vpop.permute.xlu0 %525  ;;  %s389_s25 = sadd.s32 %s1615_s11, %s1614_s10 }
  0xad   : > { %v566_v61 = vsel %vm560_vm7, %v1947_v17, %v526_v19  ;;  %v547_v62 = vpop.permute.xlu2 %546  ;;  %v914_v3 = vsel %vm560_vm7, %v2109_v27, %v877_v45  ;;  %s1616_s28 = sshll.u32 %s389_s25, 2 }
  0xae   : > { %v589_v2 = vsel %vm585_vm8, %v566_v61, %v547_v62  ;;  %s2413_s19 = scalar_lea.vmem %s2491_s5, %s1616_s28 }
  0xaf   : > { %1668 = vmatmul.msk.bf16.gmra.mxu1 %vm957_vm9, %v589_v2 }
  0xb4   : > { %v896_v6 = vpop.permute.xlu0 %895 }
  0xb5   : > { %v908_v4 = vpop.permute.xlu1 %907  ;;  %v936_v13 = vsel %vm585_vm8, %v914_v3, %v896_v6  ;;  %v1215_v15 = vpop.permute.xlu2 %1214 }
  0xb6   : > { %v948_v14 = vsel %vm585_vm8, %v932_v31, %v908_v4  ;;  %1656 = vmatmul.msk.bf16.gmra.mxu0 %vm957_vm9, %v936_v13  ;;  %v1253_v5 = vsel %vm560_vm7, %v1971_v35, %v1215_v15 }
  0xb7   : > { %1662 = vmatmul.msk.bf16.gmra.mxu3 %vm957_vm9, %v948_v14 }
  0xbc   : > { %v557_v18 = vpop.permute.xlu0 %556 }
  0xbd   : > { %v536_v17 = vpop.permute.xlu1 %535  ;;  %v528_v21 = vpop.permute.xlu2 %527 }
  0xbe   : > { %v581_v22 = vsel %vm560_vm7, %v1714_v36, %v536_v17  ;;  %v569_v35 = vsel %vm560_vm7, %v1912_v1, %v528_v21 }
  0xbf   : > { %v599_v34 = vsel %vm585_vm8, %v581_v22, %v557_v18 }
  0xc4   : > { %v879_v30 = vpop.permute.xlu0 %878 }
  0xc5   : > { %v1234_v27 = vpop.permute.xlu1 %1233  ;;  %v917_v33 = vsel %vm560_vm7, %v2036_v44, %v879_v30  ;;  %v898_v23 = vpop.permute.xlu2 %897 }
  0xc6   : > { %v1274_v28 = vsel %vm585_vm8, %v1253_v5, %v1234_v27  ;;  %v938_v0 = vsel %vm585_vm8, %v917_v33, %v898_v23  ;;  %v2407_v5 = vld [vmem:[%s2490_s4] ss:$0 sm:$0xff] }
  0xc7   : > { %1693 = vmatmul.msk.bf16.gmra.mxu2 %vm957_vm9, %v1274_v28  ;;  %1673 = vmatmul.msk.bf16.vlgmr.msrb.gmra.mxu3 %vm957_vm9, %v599_v34 }
  0xc8   : > { %1657 = vmatmul.msk.bf16.gmra.mxu0 %vm957_vm9, %v938_v0 }
  0xcc   : > { %v538_v38 = vpop.permute.xlu0 %537 }
  0xcd   : > { %v549_v36 = vpop.permute.xlu1 %548  ;;  %v559_v41 = vpop.permute.xlu2 %558  ;;  %v584_v9 = vsel %vm560_vm7, %v2115_v32, %v538_v38 }
  0xce   : > { %v591_v44 = vsel %vm585_vm8, %v569_v35, %v549_v36  ;;  %v601_v25 = vsel %vm585_vm8, %v584_v9, %v559_v41 }
  0xcf   : > { %1669 = vmatmul.msk.bf16.gmra.mxu1 %vm957_vm9, %v591_v44 }
  0xd4   : > { %v1236_v24 = vpop.permute.xlu0 %1235 }
  0xd5   : > { %v1217_v43 = vpop.permute.xlu1 %1216  ;;  %v881_v55 = vpop.permute.xlu2 %880 }
  0xd6   : > { %v1256_v7 = vsel %vm560_vm7, %v2051_v12, %v1217_v43  ;;  %v920_v12 = vsel %vm560_vm7, %v2098_v11, %v881_v55 }
  0xd7   : > { %v1276_v1 = vsel %vm585_vm8, %v1256_v7, %v1236_v24  ;;  %1674 = vmatmul.msk.bf16.gmra.mxu3 %vm957_vm9, %v601_v25 }
  0xd8   : > { %1694 = vmatmul.msk.bf16.gmra.mxu2 %vm957_vm9, %v1276_v1 }
  0xdc   : > { %v551_v20 = vpop.permute.xlu0 %550 }
  0xdd   : > { %v530_v16 = vpop.permute.xlu1 %529  ;;  %v1219_v32 = vpop.permute.xlu2 %1218 }
  0xde   : > { %v572_v26 = vsel %vm560_vm7, %v2140_v29, %v530_v16  ;;  %v1259_v52 = vsel %vm560_vm7, %v2132_v46, %v1219_v32 }
  0xdf   : > { %v593_v47 = vsel %vm585_vm8, %v572_v26, %v551_v20 }
  0xe0   : > { %1670 = vmatmul.msk.bf16.gmra.mxu1 %vm957_vm9, %v593_v47 }
  0xe4   : > { %v1223_v49 = vpop.permute.xlu0 %1222 }
  0xe5   : > { %v900_v48 = vpop.permute.xlu1 %899  ;;  %v1265_v50 = vsel %vm560_vm7, %v2249_v10, %v1223_v49  ;;  %v1242_v51 = vpop.permute.xlu2 %1241 }
  0xe6   : > { %v940_v53 = vsel %vm585_vm8, %v920_v12, %v900_v48  ;;  %v1282_v29 = vsel %vm585_vm8, %v1265_v50, %v1242_v51 }
  0xe7   : > { %1658 = vmatmul.msk.bf16.gmra.mxu0 %vm957_vm9, %v940_v53  ;;  %1697 = vmatmul.msk.bf16.vlgmr.msra.gmra.mxu3 %vm957_vm9, %v1282_v29 }
  0xec   : > { %v532_v39 = vpop.permute.xlu0 %531 }
  0xed   : > { %v1238_v40 = vpop.permute.xlu1 %1237  ;;  %v575_v11 = vsel %vm560_vm7, %v2155_v8, %v532_v39  ;;  %v553_v10 = vpop.permute.xlu2 %552 }
  0xee   : > { %v1278_v54 = vsel %vm585_vm8, %v1259_v52, %v1238_v40  ;;  %v595_v58 = vsel %vm585_vm8, %v575_v11, %v553_v10 }
  0xef   : > { %1695 = vmatmul.msk.bf16.gmra.mxu2 %vm957_vm9, %v1278_v54 }
  0xf0   : > { %1671 = vmatmul.msk.bf16.gmra.mxu1 %vm957_vm9, %v595_v58 }
  0xf4   : > { %v902_v60 = vpop.permute.xlu0 %901 }
  0xf5   : > { %v883_v59 = vpop.permute.xlu1 %882  ;;  %v1225_v46 = vpop.permute.xlu2 %1224 }
  0xf6   : > { %v923_v45 = vsel %vm560_vm7, %v2194_v63, %v883_v59  ;;  %v1268_v3 = vsel %vm560_vm7, %v2149_v57, %v1225_v46 }
  0xf7   : > { %v942_v19 = vsel %vm585_vm8, %v923_v45, %v902_v60 }
  0xf8   : > { %1659 = vmatmul.msk.bf16.gmra.mxu0 %vm957_vm9, %v942_v19 }
  0xfc   : > { %v1240_v61 = vpop.permute.xlu0 %1239 }
  0xfd   : > { %v1221_v8 = vpop.permute.xlu1 %1220  ;;  %v534_v2 = vpop.permute.xlu2 %533 }
  0xfe   : > { %v1262_v62 = vsel %vm560_vm7, %v2167_v42, %v1221_v8  ;;  %v578_v15 = vsel %vm560_vm7, %v2191_v56, %v534_v2 }
  0xff   : > { %v1280_v31 = vsel %vm585_vm8, %v1262_v62, %v1240_v61 }
 0x100   : > { %1696 = vmatmul.msk.bf16.gmra.mxu2 %vm957_vm9, %v1280_v31 }
 0x104   : > { %v885_v4 = vpop.permute.xlu0 %884 }
 0x105   : > { %v1244_v63 = vpop.permute.xlu1 %1243  ;;  %v926_v6 = vsel %vm560_vm7, %v2218_v37, %v885_v4  ;;  %v904_v42 = vpop.permute.xlu2 %903 }
 0x106   : > { %v1284_v13 = vsel %vm585_vm8, %v1268_v3, %v1244_v63  ;;  %v944_v14 = vsel %vm585_vm8, %v926_v6, %v904_v42 }
 0x107   : > { %1698 = vmatmul.msk.bf16.gmra.mxu3 %vm957_vm9, %v1284_v13 }
 0x108   : > { %1660 = vmatmul.msk.bf16.gmra.mxu0 %vm957_vm9, %v944_v14 }
 0x109   : > { %v1060_v18 = vpop.f32.mrf.mxu1 }
 0x10d   : > { %v555_v17 = vpop.permute.xlu1 %554 }
 0x10e   : > { %v597_v57 = vsel %vm585_vm8, %v578_v15, %v555_v17 }
 0x10f   : > { %1672 = vmatmul.msk.bf16.gmra.mxu1 %vm957_vm9, %v597_v57 }
 0x111   : > { %v1062_v30 = vpop.f32.mrf.mxu1 }
 0x11a   : > { %v1321_v21 = vpop.f32.mrf.mxu2 }
 0x122   : > { %v1323_v33 = vpop.f32.mrf.mxu2 }
 0x123   : > { %v987_v37 = vpop.f32.mrf.mxu0 }
 0x124   : > { %v1061_v22 = vadd.f32 %v1060_v18, %v987_v37 }
 0x126   : > { %v1361_v27 = vadd.f32 %v1321_v21, %v1061_v22 }
 0x128   : > { %v1381_v56 = vadd.f32 %v2407_v5, %v1361_v27 }
 0x12a   : > { %v1397_v28 = vmax.f32 %v1381_v56, 0.0  ;;  %v1017_v34 = vpop.f32.mrf.mxu3  ;;  %v1326_v43 = vpop.f32.mrf.mxu2 }
 0x12b   : > { %v989_v23 = vpop.f32.mrf.mxu0 }
 0x12c   : > { %v1413_v0 = vpack.c.bf16 %v1397_v28, %v1397_v28  ;;  %v1063_v35 = vadd.f32 %v1062_v30, %v989_v23  ;;  %v1065_v44 = vpop.f32.mrf.mxu1 }
 0x12e   : > { %1430 = vst.msk [vmem:[%s2413_s19] sm:$0xf] %vm1429_vm10, %v1413_v0  ;;  %v1362_v36 = vadd.f32 %v1323_v33, %v1063_v35 }
 0x130   : > { %v1382_v38 = vadd.f32 %v2407_v5, %v1362_v36 }
 0x132   : > { %v1398_v41 = vmax.f32 %v1382_v38, 0.0  ;;  %v2418_v9 = vpop.f32.mrf.mxu3  ;;  %v1328_v48 = vpop.f32.mrf.mxu2 }
 0x133   : > { %v992_v24 = vpop.f32.mrf.mxu0 }
 0x134   : > { %v1414_v25 = vpack.c.bf16 %v1398_v41, %v1398_v41  ;;  %v1066_v7 = vadd.f32 %v1065_v44, %v992_v24  ;;  %v1067_v26 = vpop.f32.mrf.mxu1 }
 0x136   : > { %1431 = vst.msk [vmem:[%s2413_s19 + $0x4] sm:$0xf] %vm1429_vm10, %v1414_v25  ;;  %v1363_v55 = vadd.f32 %v1326_v43, %v1066_v7 }
 0x138   : > { %v1383_v1 = vadd.f32 %v2407_v5, %v1363_v55 }
 0x13a   : > { %v1399_v16 = vmax.f32 %v1383_v1, 0.0  ;;  %v2423_v20 = vpop.f32.mrf.mxu3 }
 0x13b   : > { %v994_v32 = vpop.f32.mrf.mxu0 }
 0x13c   : > { %v1415_v47 = vpack.c.bf16 %v1399_v16, %v1399_v16  ;;  %v1068_v12 = vadd.f32 %v1067_v26, %v994_v32 }
 0x13e   : > { %1432 = vst.msk [vmem:[%s2413_s19 + $0x8] sm:$0xf] %vm1429_vm10, %v1415_v47  ;;  %v1364_v49 = vadd.f32 %v1328_v48, %v1068_v12 }
 0x140   : > { %v1384_v50 = vadd.f32 %v2407_v5, %v1364_v49 }
 0x142   : > { %v1400_v53 = vmax.f32 %v1384_v50, 0.0  ;;  %v2428_v51 = vpop.f32.mrf.mxu3 }
 0x144   : > { %v1416_v29 = vpack.c.bf16 %v1400_v53, %v1400_v53 }
 0x145   : > { %v997_v52 = vpop.f32.mrf.mxu0 }
 0x146   : > { %1433 = vst.msk [vmem:[%s2413_s19 + $0xc] sm:$0xf] %vm1429_vm10, %v1416_v29 }
 0x14a   : > { %v1090_v40 = vpop.f32.mrf.mxu3  ;;  %v1331_v39 = vpop.f32.mrf.mxu2 }
 0x14b   : > { %v1091_v18 = vadd.f32 %v1090_v40, %v1017_v34 }
 0x14c   : > { %v1070_v11 = vpop.f32.mrf.mxu1 }
 0x14d   : > { %v1071_v54 = vadd.f32 %v1070_v11, %v997_v52  ;;  %v999_v45 = vpop.f32.mrf.mxu0 }
 0x14f   : > { %v1365_v10 = vadd.f32 %v1331_v39, %v1071_v54 }
 0x151   : > { %v1385_v58 = vadd.f32 %v2407_v5, %v1365_v10 }
 0x152   : > { %v1092_v60 = vpop.f32.mrf.mxu3  ;;  %v1333_v61 = vpop.f32.mrf.mxu2 }
 0x153   : > { %v1401_v59 = vmax.f32 %v1385_v58, 0.0  ;;  %v1093_v36 = vadd.f32 %v1092_v60, %v2418_v9 }
 0x154   : > { %v1072_v46 = vpop.f32.mrf.mxu1 }
 0x155   : > { %v1417_v19 = vpack.c.bf16 %v1401_v59, %v1401_v59  ;;  %v1073_v8 = vadd.f32 %v1072_v46, %v999_v45 }
 0x157   : > { %1434 = vst.msk [vmem:[%s2413_s19 + $0x10] sm:$0xf] %vm1429_vm10, %v1417_v19  ;;  %v1366_v62 = vadd.f32 %v1333_v61, %v1073_v8 }
 0x159   : > { %v1386_v2 = vadd.f32 %v2407_v5, %v1366_v62 }
 0x15a   : > { %v1095_v3 = vpop.f32.mrf.mxu3 }
 0x15b   : > { %v1402_v31 = vmax.f32 %v1386_v2, 0.0  ;;  %v1336_v6 = vpop.f32.mrf.mxu2  ;;  %v1096_v11 = vadd.f32 %v1095_v3, %v2423_v20 }
 0x15d   : > { %v1418_v63 = vpack.c.bf16 %v1402_v31, %v1402_v31  ;;  %v1075_v4 = vpop.f32.mrf.mxu1 }
 0x15f   : > { %1435 = vst.msk [vmem:[%s2413_s19 + $0x14] sm:$0xf] %vm1429_vm10, %v1418_v63 }
 0x162   : > { %v1097_v13 = vpop.f32.mrf.mxu3 }
 0x163   : > { %v1338_v27 = vpop.f32.mrf.mxu2  ;;  %v1098_v61 = vadd.f32 %v1097_v13, %v2428_v51 }
 0x164   : > { %v1002_v42 = vpop.f32.mrf.mxu0 }
 0x165   : > { %v1076_v14 = vadd.f32 %v1075_v4, %v1002_v42  ;;  %v1077_v57 = vpop.f32.mrf.mxu1 }
 0x167   : > { %v1367_v15 = vadd.f32 %v1336_v6, %v1076_v14 }
 0x169   : > { %v1387_v17 = vadd.f32 %v2407_v5, %v1367_v15 }
 0x16a   : > { %v1351_v22 = vpop.f32.mrf.mxu3 }
 0x16b   : > { %v1403_v21 = vmax.f32 %v1387_v17, 0.0  ;;  %v1373_v33 = vadd.f32 %v1351_v22, %v1091_v18 }
 0x16c   : > { %v1004_v37 = vpop.f32.mrf.mxu0 }
 0x16d   : > { %v1419_v56 = vpack.c.bf16 %v1403_v21, %v1403_v21  ;;  %v1078_v30 = vadd.f32 %v1077_v57, %v1004_v37  ;;  %v1393_v23 = vadd.f32 %v2407_v5, %v1373_v33  ;;  %v1080_v44 = vpop.f32.mrf.mxu1 }
 0x16f   : > { %1436 = vst.msk [vmem:[%s2413_s19 + $0x18] sm:$0xf] %vm1429_vm10, %v1419_v56  ;;  %v1368_v28 = vadd.f32 %v1338_v27, %v1078_v30  ;;  %v1409_v35 = vmax.f32 %v1393_v23, 0.0 }
 0x171   : > { %v1388_v0 = vadd.f32 %v2407_v5, %v1368_v28  ;;  %v1425_v38 = vpack.c.bf16 %v1409_v35, %v1409_v35 }
 0x172   : > { %v1353_v41 = vpop.f32.mrf.mxu3  ;;  %v1341_v24 = vpop.f32.mrf.mxu2 }
 0x173   : > { %v1404_v34 = vmax.f32 %v1388_v0, 0.0  ;;  %1442 = vst.msk [vmem:[%s2413_s19 + $0x30] sm:$0xf] %vm1429_vm10, %v1425_v38  ;;  %v1374_v25 = vadd.f32 %v1353_v41, %v1093_v36 }
 0x175   : > { %v1420_v43 = vpack.c.bf16 %v1404_v34, %v1404_v34  ;;  %v1007_v7 = vpop.f32.mrf.mxu0  ;;  %v1394_v1 = vadd.f32 %v2407_v5, %v1374_v25  ;;  %v1082_v12 = vpop.f32.mrf.mxu1 }
 0x176   : > { %v1081_v55 = vadd.f32 %v1080_v44, %v1007_v7 }
 0x177   : > { %1437 = vst.msk [vmem:[%s2413_s19 + $0x1c] sm:$0xf] %vm1429_vm10, %v1420_v43  ;;  %v1410_v9 = vmax.f32 %v1394_v1, 0.0 }
 0x178   : > { %v1369_v16 = vadd.f32 %v1341_v24, %v1081_v55 }
 0x179   : > { %v1426_v32 = vpack.c.bf16 %v1410_v9, %v1410_v9 }
 0x17a   : > { %v1389_v26 = vadd.f32 %v2407_v5, %v1369_v16  ;;  %v1343_v53 = vpop.f32.mrf.mxu2 }
 0x17b   : > { %1443 = vst.msk [vmem:[%s2413_s19 + $0x34] sm:$0xf] %vm1429_vm10, %v1426_v32 }
 0x17c   : > { %v1405_v47 = vmax.f32 %v1389_v26, 0.0 }
 0x17d   : > { %v1009_v48 = vpop.f32.mrf.mxu0 }
 0x17e   : > { %v1421_v49 = vpack.c.bf16 %v1405_v47, %v1405_v47  ;;  %v1083_v50 = vadd.f32 %v1082_v12, %v1009_v48 }
 0x180   : > { %1438 = vst.msk [vmem:[%s2413_s19 + $0x20] sm:$0xf] %vm1429_vm10, %v1421_v49  ;;  %v1370_v29 = vadd.f32 %v1343_v53, %v1083_v50 }
 0x182   : > { %v1390_v52 = vadd.f32 %v2407_v5, %v1370_v29 }
 0x183   : > { %v1346_v59 = vpop.f32.mrf.mxu2 }
 0x184   : > { %v1406_v40 = vmax.f32 %v1390_v52, 0.0 }
 0x185   : > { %v1012_v54 = vpop.f32.mrf.mxu0 }
 0x186   : > { %v1422_v39 = vpack.c.bf16 %v1406_v40, %v1406_v40 }
 0x188   : > { %1439 = vst.msk [vmem:[%s2413_s19 + $0x24] sm:$0xf] %vm1429_vm10, %v1422_v39 }
 0x18a   : > { %v1356_v10 = vpop.f32.mrf.mxu3 }
 0x18b   : > { %v1375_v58 = vadd.f32 %v1356_v10, %v1096_v11  ;;  %v1348_v15 = vpop.f32.mrf.mxu2 }
 0x18c   : > { %v1085_v60 = vpop.f32.mrf.mxu1 }
 0x18d   : > { %v1395_v45 = vadd.f32 %v2407_v5, %v1375_v58  ;;  %v1086_v46 = vadd.f32 %v1085_v60, %v1012_v54  ;;  %v1014_v63 = vpop.f32.mrf.mxu0 }
 0x18f   : > { %v1411_v19 = vmax.f32 %v1395_v45, 0.0  ;;  %v1371_v8 = vadd.f32 %v1346_v59, %v1086_v46 }
 0x191   : > { %v1427_v62 = vpack.c.bf16 %v1411_v19, %v1411_v19  ;;  %v1391_v2 = vadd.f32 %v2407_v5, %v1371_v8 }
 0x192   : > { %v1358_v31 = vpop.f32.mrf.mxu3 }
 0x193   : > { %1444 = vst.msk [vmem:[%s2413_s19 + $0x38] sm:$0xf] %vm1429_vm10, %v1427_v62  ;;  %v1407_v20 = vmax.f32 %v1391_v2, 0.0  ;;  %v1376_v3 = vadd.f32 %v1358_v31, %v1098_v61 }
 0x194   : > { %v1087_v4 = vpop.f32.mrf.mxu1 }
 0x195   : > { %v1423_v6 = vpack.c.bf16 %v1407_v20, %v1407_v20  ;;  %v1396_v42 = vadd.f32 %v2407_v5, %v1376_v3  ;;  %v1088_v14 = vadd.f32 %v1087_v4, %v1014_v63 }
 0x197   : > { %1440 = vst.msk [vmem:[%s2413_s19 + $0x28] sm:$0xf] %vm1429_vm10, %v1423_v6  ;;  %v1412_v51 = vmax.f32 %v1396_v42, 0.0  ;;  %v1372_v13 = vadd.f32 %v1348_v15, %v1088_v14 }
 0x199   : > { %v1428_v17 = vpack.c.bf16 %v1412_v51, %v1412_v51  ;;  %v1392_v57 = vadd.f32 %v2407_v5, %v1372_v13 }
 0x19b   : > { %1445 = vst.msk [vmem:[%s2413_s19 + $0x3c] sm:$0xf] %vm1429_vm10, %v1428_v17  ;;  %v1408_v18 = vmax.f32 %v1392_v57, 0.0 }
 0x19d   : > { %v1424_v21 = vpack.c.bf16 %v1408_v18, %v1408_v18 }
 0x19f   : > { %1441 = vst.msk [vmem:[%s2413_s19 + $0x2c] sm:$0xf] %vm1429_vm10, %v1424_v21 }
 0x1a0 PF: > { %s15_s22 = sadd.s32 1, %s1816_s22   ;;  %s2497_s18 = smov %s1808_s20 }
 0x1a1   : > { %p12_p0 = scmp.ge.s32.totalorder %s15_s22, 6   ;;  %s2498_s19 = smov %s1812_s21 }
 0x1a2   : > { %s2499_s20 = smov %s2502_s23  ;;  %s2500_s21 = smov %s2506_s24 }
 0x1a3   :  { %14 = sbr.rel (!%p12_p0) target bundleno = 3 (0x3), region = 78 }

</bundles_post_ra>
